<compile_context>
chip_gen: v7x
topology: tpu7x:2x2x1
jax: 0.10.0
libtpu: 0.0.40
codegen_flags: <defaults>
</compile_context>

<pallas_src>
import jax
import jax.numpy as jnp
from jax import lax
from jax.experimental import pallas as pl
from jax.experimental.pallas import tpu as pltpu


def _round_up(x, m):
    return ((x + m - 1) // m) * m


def rnn_step_kernel(xp_ref, whh_ref, wfc_ref, bfc_ref, out_ref, h_ref):
    # xp_ref:  (TB, Hp)   gathered (embedding @ Wih^T + bias) for timestep t (T dim squeezed)
    # whh_ref: (Hp, Hp)   zero-padded weight_hh_l0.T
    # wfc_ref: (Hp, Op)   zero-padded fc.weight.T (lane-dense output)
    # bfc_ref: (1,  Op)   zero-padded fc.bias
    # out_ref: (TB, Op)   resident across the T axis; written only at t == T-1
    # h_ref:   (TB, Hp)   VMEM scratch hidden state, persists across grid steps
    t = pl.program_id(1)

    @pl.when(t == 0)
    def _init():
        h_ref[...] = jnp.zeros_like(h_ref)

    pre = xp_ref[...] + jnp.dot(h_ref[...], whh_ref[...],
                                preferred_element_type=jnp.float32)
    h_ref[...] = jnp.tanh(pre)

    @pl.when(t == pl.num_programs(1) - 1)
    def _final():
        out_ref[...] = (jnp.dot(h_ref[...], wfc_ref[...],
                                preferred_element_type=jnp.float32)
                        + bfc_ref[...])


def simple_rnn_forward(token_ids, params):
    """token_ids: (B, T) int32.  Returns (B, output_size) f32, matching SimpleRNN.forward."""
    B, T = token_ids.shape
    E, H = params["w_ih_t"].shape
    OUT = params["w_fc_t"].shape[1]
    hi = lax.Precision.HIGHEST

    H_PAD = _round_up(H, 128)
    OUT_PAD = _round_up(OUT, 128)
    B_PAD = _round_up(max(B, 8), 8)
    TB = B_PAD if B_PAD <= 256 else 256
    B_PAD = _round_up(B_PAD, TB)

    # Fold the input projection (and the combined RNN bias) into the embedding table:
    # one big MXU matmul outside the serial chain, then a (T, B, H) gather (time-major
    # directly -- no activation transpose/round-trip).
    proj_table = jnp.dot(params["embedding"], params["w_ih_t"], precision=hi) + params["b"]
    proj_table = jnp.pad(proj_table, ((0, 0), (0, H_PAD - H)))            # (V, Hp)

    ids = jnp.pad(token_ids, ((0, B_PAD - B), (0, 0)))                    # pad batch w/ token 0
    x_proj = proj_table[jnp.transpose(ids)]                               # (T, B_PAD, Hp)

    whh = jnp.pad(params["w_hh_t"], ((0, H_PAD - H), (0, H_PAD - H)))     # (Hp, Hp)
    wfc = jnp.pad(params["w_fc_t"], ((0, H_PAD - H), (0, OUT_PAD - OUT))) # (Hp, Op)
    bfc = jnp.pad(params["b_fc"], ((0, 0), (0, OUT_PAD - OUT)))           # (1, Op)

    grid = (B_PAD // TB, T)
    out = pl.pallas_call(
        rnn_step_kernel,
        out_shape=jax.ShapeDtypeStruct((B_PAD, OUT_PAD), jnp.float32),
        grid_spec=pltpu.PrefetchScalarGridSpec(
            num_scalar_prefetch=0,
            grid=grid,
            in_specs=[
                # per-timestep slice of the projected input; T dim squeezed out
                pl.BlockSpec((None, TB, H_PAD), lambda bi, t: (t, bi, 0)),
                pl.BlockSpec((H_PAD, H_PAD), lambda bi, t: (0, 0)),
                pl.BlockSpec((H_PAD, OUT_PAD), lambda bi, t: (0, 0)),
                pl.BlockSpec((1, OUT_PAD), lambda bi, t: (0, 0)),
            ],
            out_specs=pl.BlockSpec((TB, OUT_PAD), lambda bi, t: (bi, 0)),
            scratch_shapes=[pltpu.VMEM((TB, H_PAD), jnp.float32)],
        ),
        compiler_params=pltpu.CompilerParams(
            dimension_semantics=("parallel", "arbitrary")),
    )(x_proj, whh, wfc, bfc)

    return out[:B, :OUT]


def init_params(key, vocab_size, embedding_dim, hidden_size, output_size):
    ks = jax.random.split(key, 7)
    # nn.Embedding: N(0,1) init, padding_idx=0 row zeroed.
    emb = jax.random.normal(ks[0], (vocab_size, embedding_dim), jnp.float32)
    emb = emb.at[0].set(0.0)
    # nn.RNN / nn.Linear default init: U(-1/sqrt(H), 1/sqrt(H)).
    k = 1.0 / float(hidden_size) ** 0.5
    w_ih = jax.random.uniform(ks[1], (hidden_size, embedding_dim), jnp.float32, -k, k)
    w_hh = jax.random.uniform(ks[2], (hidden_size, hidden_size), jnp.float32, -k, k)
    b_ih = jax.random.uniform(ks[3], (hidden_size,), jnp.float32, -k, k)
    b_hh = jax.random.uniform(ks[4], (hidden_size,), jnp.float32, -k, k)
    w_fc = jax.random.uniform(ks[5], (output_size, hidden_size), jnp.float32, -k, k)
    b_fc = jax.random.uniform(ks[6], (output_size,), jnp.float32, -k, k)
    return dict(
        embedding=emb,
        w_ih_t=w_ih.T,                     # (E, H)
        w_hh_t=w_hh.T,                     # (H, H)
        b=(b_ih + b_hh)[None, :],          # (1, H)
        w_fc_t=w_fc.T,                     # (H, OUT)
        b_fc=b_fc[None, :],                # (1, OUT)
    )


def reference_forward(token_ids, params):
    """Pure-JAX reference replicating PyTorch SimpleRNN semantics."""
    hi = lax.Precision.HIGHEST
    x = params["embedding"][token_ids]                      # (B, T, E)
    B, T, _ = x.shape
    H = params["w_hh_t"].shape[0]
    h = jnp.zeros((B, H), jnp.float32)
    for t in range(T):
        h = jnp.tanh(jnp.dot(x[:, t, :], params["w_ih_t"], precision=hi)
                     + jnp.dot(h, params["w_hh_t"], precision=hi)
                     + params["b"])
    return jnp.dot(h, params["w_fc_t"], precision=hi) + params["b_fc"]


if __name__ == "__main__":
    vocab_size = 64          # synthetic vocab (dataset-derived in the original script)
    embedding_dim = 100
    hidden_size = 50
    output_size = 1
    batch = 2
    seq_len = 8

    root = jax.random.PRNGKey(0)
    k_params, k_tokens = jax.random.split(root)
    params = init_params(k_params, vocab_size, embedding_dim, hidden_size, output_size)
    token_ids = jax.random.randint(k_tokens, (batch, seq_len), 0, vocab_size, dtype=jnp.int32)

    out = simple_rnn_forward(token_ids, params)
    out = jax.block_until_ready(out)

    ref = reference_forward(token_ids, params)
    assert out.shape == (batch, output_size), out.shape
    assert jnp.allclose(out, ref, atol=2e-4, rtol=2e-4), (out, ref)

    print("KERNEL_OK")
</pallas_src>

<mosaic_0001>
module attributes {stable_mosaic.version = 11 : i64} {
  func.func @rnn_step_kernel(%arg0: i32, %arg1: i32, %arg2: memref<1x8x128xf32, #tpu.memory_space<vmem>>, %arg3: memref<128x128xf32, #tpu.memory_space<vmem>>, %arg4: memref<128x128xf32, #tpu.memory_space<vmem>>, %arg5: memref<1x128xf32, #tpu.memory_space<vmem>>, %arg6: memref<8x128xf32, #tpu.memory_space<vmem>>, %arg7: memref<8x128xf32, #tpu.memory_space<vmem>>) attributes {dimension_semantics = [#tpu.dimension_semantics<parallel>, #tpu.dimension_semantics<arbitrary>], iteration_bounds = array<i64: 1, 8>, scalar_prefetch = 0 : i64, scratch_operands = 1 : i64, tpu.core_type = #tpu.core_type<tc>, window_params = [{transform_indices = @transform_0, window_bounds = array<i64: 1, 8, 128>}, {pipeline_mode = #tpu.pipeline_mode<synchronous>, transform_indices = @transform_1, window_bounds = array<i64: 128, 128>}, {pipeline_mode = #tpu.pipeline_mode<synchronous>, transform_indices = @transform_2, window_bounds = array<i64: 128, 128>}, {pipeline_mode = #tpu.pipeline_mode<synchronous>, transform_indices = @transform_3, window_bounds = array<i64: 1, 128>}, {transform_indices = @transform_4, window_bounds = array<i64: 8, 128>}]} {
    %c0_i32 = arith.constant 0 : i32
    %0 = arith.cmpi eq, %arg1, %c0_i32 : i32
    %1 = arith.extui %0 : i1 to i32
    %c0_i32_0 = arith.constant 0 : i32
    %2 = arith.cmpi ne, %1, %c0_i32_0 : i32
    scf.if %2 {
      %cst_10 = arith.constant 0.000000e+00 : f32
      %14 = vector.broadcast %cst_10 : f32 to vector<8x128xf32>
      %c0_11 = arith.constant 0 : index
      %c0_12 = arith.constant 0 : index
      %15 = vector.load %arg7[%c0_11, %c0_12] : memref<8x128xf32, #tpu.memory_space<vmem>>, vector<8x128xf32>
      tpu.vector_store %arg7[%c0_11, %c0_12], %14 {strides = array<i32>} : memref<8x128xf32, #tpu.memory_space<vmem>>, vector<8x128xf32>,
    } else {
    }
    %c0 = arith.constant 0 : index
    %c0_1 = arith.constant 0 : index
    %c0_2 = arith.constant 0 : index
    %3 = vector.load %arg2[%c0, %c0_1, %c0_2] : memref<1x8x128xf32, #tpu.memory_space<vmem>>, vector<1x8x128xf32>
    %4 = vector.shape_cast %3 : vector<1x8x128xf32> to vector<8x128xf32>
    %c0_3 = arith.constant 0 : index
    %c0_4 = arith.constant 0 : index
    %5 = vector.load %arg7[%c0_3, %c0_4] : memref<8x128xf32, #tpu.memory_space<vmem>>, vector<8x128xf32>
    %c0_5 = arith.constant 0 : index
    %c0_6 = arith.constant 0 : index
    %6 = vector.load %arg3[%c0_5, %c0_6] : memref<128x128xf32, #tpu.memory_space<vmem>>, vector<128x128xf32>
    %cst = arith.constant dense<0.000000e+00> : vector<8x128xf32>
    %7 = tpu.matmul %5, %6, %cst {dimension_numbers = #tpu.dot_dimension_numbers<[1], [0], [0], [1], [0, 0, 1, 1], [], []>} : vector<8x128xf32>, vector<128x128xf32>, vector<8x128xf32> -> vector<8x128xf32>
    %8 = arith.addf %4, %7 : vector<8x128xf32>
    %9 = math.tanh %8 : vector<8x128xf32>
    %c0_7 = arith.constant 0 : index
    %c0_8 = arith.constant 0 : index
    %10 = vector.load %arg7[%c0_7, %c0_8] : memref<8x128xf32, #tpu.memory_space<vmem>>, vector<8x128xf32>
    tpu.vector_store %arg7[%c0_7, %c0_8], %9 {strides = array<i32>} : memref<8x128xf32, #tpu.memory_space<vmem>>, vector<8x128xf32>,
    %c7_i32 = arith.constant 7 : i32
    %11 = arith.cmpi eq, %arg1, %c7_i32 : i32
    %12 = arith.extui %11 : i1 to i32
    %c0_i32_9 = arith.constant 0 : i32
    %13 = arith.cmpi ne, %12, %c0_i32_9 : i32
    scf.if %13 {
      %c0_10 = arith.constant 0 : index
      %c0_11 = arith.constant 0 : index
      %14 = vector.load %arg7[%c0_10, %c0_11] : memref<8x128xf32, #tpu.memory_space<vmem>>, vector<8x128xf32>
      %c0_12 = arith.constant 0 : index
      %c0_13 = arith.constant 0 : index
      %15 = vector.load %arg4[%c0_12, %c0_13] : memref<128x128xf32, #tpu.memory_space<vmem>>, vector<128x128xf32>
      %cst_14 = arith.constant dense<0.000000e+00> : vector<8x128xf32>
      %16 = tpu.matmul %14, %15, %cst_14 {dimension_numbers = #tpu.dot_dimension_numbers<[1], [0], [0], [1], [0, 0, 1, 1], [], []>} : vector<8x128xf32>, vector<128x128xf32>, vector<8x128xf32> -> vector<8x128xf32>
      %c0_15 = arith.constant 0 : index
      %c0_16 = arith.constant 0 : index
      %17 = vector.load %arg5[%c0_15, %c0_16] : memref<1x128xf32, #tpu.memory_space<vmem>>, vector<1x128xf32>
      %18 = vector.broadcast %17 : vector<1x128xf32> to vector<8x128xf32>
      %19 = arith.addf %16, %18 : vector<8x128xf32>
      %c0_17 = arith.constant 0 : index
      %c0_18 = arith.constant 0 : index
      %20 = vector.load %arg6[%c0_17, %c0_18] : memref<8x128xf32, #tpu.memory_space<vmem>>, vector<8x128xf32>
      tpu.vector_store %arg6[%c0_17, %c0_18], %19 {strides = array<i32>} : memref<8x128xf32, #tpu.memory_space<vmem>>, vector<8x128xf32>,
    } else {
    }
    return
  }
  func.func @transform_0(%arg0: i32, %arg1: i32) -> (i32, i32, i32) {
    %c0_i32 = arith.constant 0 : i32
    %c0_i32_0 = arith.constant 0 : i32
    return %arg1, %arg0, %c0_i32 : i32, i32, i32
  }
  func.func @transform_1(%arg0: i32, %arg1: i32) -> (i32, i32) {
    %c0_i32 = arith.constant 0 : i32
    %c0_i32_0 = arith.constant 0 : i32
    %c0_i32_1 = arith.constant 0 : i32
    return %c0_i32, %c0_i32_0 : i32, i32
  }
  func.func @transform_2(%arg0: i32, %arg1: i32) -> (i32, i32) {
    %c0_i32 = arith.constant 0 : i32
    %c0_i32_0 = arith.constant 0 : i32
    %c0_i32_1 = arith.constant 0 : i32
    return %c0_i32, %c0_i32_0 : i32, i32
  }
  func.func @transform_3(%arg0: i32, %arg1: i32) -> (i32, i32) {
    %c0_i32 = arith.constant 0 : i32
    %c0_i32_0 = arith.constant 0 : i32
    %c0_i32_1 = arith.constant 0 : i32
    return %c0_i32, %c0_i32_0 : i32, i32
  }
  func.func @transform_4(%arg0: i32, %arg1: i32) -> (i32, i32) {
    %c0_i32 = arith.constant 0 : i32
    %c0_i32_0 = arith.constant 0 : i32
    return %arg0, %c0_i32 : i32, i32
  }
}

</mosaic_0001>

<bundles_post_ra>
// kernel: tpu_custom_call.1
= control target key start
LH: loop header
LB: loop body
LE: loop exit
PB: predicated region body
PF: predicated region fallthrough
CT: control target
= control target key end

     0   :  { %9 = vsyncpa [#allocation4], 0  ;;  %s1234_s0 = inlined_call_operand.hbm [shape: f32[8,8,128], index: 0, kind: input, shape index: {}]   ;;  %s1235_s1 = inlined_call_operand.hbm [shape: f32[128,128], index: 1, kind: input, shape index: {}]   ;;  %s1236_s2 = inlined_call_operand.hbm [shape: f32[128,128], index: 2, kind: input, shape index: {}]   ;;  %s1237_s3 = inlined_call_operand.vmem [shape: f32[1,128], index: 3, kind: input, shape index: {}]   ;;  %s1238_s4 = inlined_call_operand.hbm [shape: f32[8,128], index: 4, kind: output, shape index: {}]  }
   0x1   :  { %11 = vsyncpa [#allocation4 + $0x1], 0 }
   0x2   :  { %12 = vsyncpa [#allocation7], 0 }
   0x3   :  { %13 = vsyncpa [#allocation5], 0  ;;  %s1009_s15 = smov 0   ;;  %s1011_s16 = smov 0  }
   0x4   :  { %s1013_s17 = smov 0   ;;  %s1015_s18 = smov 0  }
   0x5   :  { %s1017_s19 = smov 0   ;;  %s1019_s20 = smov 0  }
   0x6 LB: > { %s535_s21 = sadd.s32 4294967295, %s969_s20   ;;  %p53_p0 = scmp.ne.s32.totalorder %s953_s16, %s949_s15  ;;  %s969_s20 = sphi %s1019_s20, %s19_s20   ;;  %s965_s19 = sphi %s1017_s19, %s1256_s19   ;;  %s961_s18 = sphi %s1015_s18, %s1255_s18   ;;  %s957_s17 = sphi %s1013_s17, %s1254_s17   ;;  %s953_s16 = sphi %s1011_s16, %s1253_s16   ;;  %s949_s15 = sphi %s1009_s15, %s1252_s15  }
   0x7   : > { %p1041_p1 = scmp.eq.s32.totalorder %s535_s21, 0  ;;  %p536_p2 = scmp.ge.s32.totalorder %s969_s20, 1 }
   0x8   : > { %p153_p3 = scmp.lt.s32.totalorder %s969_s20, 9  ;;  %s971_s25 = smov [#allocation6]  }
   0x9   : > { %s1243_s22 = scalar_select %p1041_p1, 1, 0 }
   0xa   : > { %p1049_p4 = por %p1041_p1, %p53_p0  ;;  %p1053_p5 = pnand %p536_p2, %p153_p3 }
   0xb   : > { %s165_s26 = sshll.u32 %s971_s25, 4  ;;  %s972_s28 = smov [#allocation8]   ;;  %s166_s26 = int_to_ptr.vmem [resolvable:$true] %s165_s26 }
   0xc   : > { %s1244_s23 = scalar_select %p1049_p4, 1, 0 }
   0xd   : > { %s1245_s24 = scalar_select %p1053_p5, 1, 0 }
   0xe   : > { %p719_p6 = pneg %p1053_p5  ;;  %s178_s29 = sshll.u32 %s972_s28, 4  ;;  %s1065_s29 = int_to_ptr.vmem [resolvable:$true] %s178_s29 }
   0xf   : > { %s799_s6 = scalar_lea.hbm %s1235_s1, 2048 }
  0x10   : > { %p1061_p7 = pnand %p719_p6, %p1041_p1  ;;  %p800_p8 = scmp.ne.s32.totalorder %s1235_s1, %s799_s6 }
  0x11   : > { %p806_p12 = scmp.lt.u32.totalorder %s799_s6, %s1235_s1 }
  0x12   : > { %p801_p9 = pneg %p1061_p7 }
  0x14   : > { %p802_p10 = pnand %p801_p9, %p800_p8 }
  0x16   : > { %p803_p11 = pneg %p802_p10 }
  0x18   : > { %p808_p13 = pnand %p806_p12, %p803_p11 }
  0x1a   : > { %811 = shalt.err (!%p808_p13)
}
  0x1b   : > { %s812_s11 = scalar_lea.vmem %s166_s26, 2048  ;;  %p820_p6 = scmp.lt.s32.totalorder %s166_s26, %s166_s26 }
  0x1c   : > { %p813_p0 = scmp.ne.s32.totalorder %s166_s26, %s812_s11  ;;  %p821_p1 = scmp.lt.s32.totalorder %s812_s11, %s812_s11 }
  0x1e   : > { %p815_p2 = pnand %p813_p0, %p801_p9  ;;  %p822_p4 = por %p821_p1, %p820_p6 }
  0x20   : > { %p816_p3 = pneg %p815_p2 }
  0x22   : > { %p823_p5 = pnand %p822_p4, %p816_p3 }
  0x24   : > { %826 = shalt.err (!%p823_p5)
}
  0x25   : > { %s973_s12 = smov 128   ;;  %s974_s13 = smov 8  }
  0x26   : > { %722 = dma.hbm_to_vmem [thread:$0]  (!%p1061_p7), %s1235_s1, 2048, %s166_s26, [#allocation7], %s973_s12, %s973_s12, %s974_s13  }
  0x27   : > { %s827_s30 = scalar_lea.hbm %s1236_s2, 2048 }
  0x28   : > { %p828_p8 = scmp.ne.s32.totalorder %s1236_s2, %s827_s30  ;;  %p834_p5 = scmp.lt.u32.totalorder %s827_s30, %s1236_s2 }
  0x2a   : > { %p830_p1 = pnand %p828_p8, %p801_p9 }
  0x2c   : > { %p831_p4 = pneg %p830_p1 }
  0x2e   : > { %p836_p10 = pnand %p834_p5, %p831_p4 }
  0x30   : > { %839 = shalt.err (!%p836_p10)
}
  0x31   : > { %s840_s26 = scalar_lea.vmem %s1065_s29, 2048  ;;  %p848_p0 = scmp.lt.s32.totalorder %s1065_s29, %s1065_s29 }
  0x32   : > { %p841_p11 = scmp.ne.s32.totalorder %s1065_s29, %s840_s26  ;;  %p849_p2 = scmp.lt.s32.totalorder %s840_s26, %s840_s26 }
  0x34   : > { %p843_p12 = pnand %p841_p11, %p801_p9  ;;  %p850_p3 = por %p849_p2, %p848_p0 }
  0x36   : > { %p844_p13 = pneg %p843_p12 }
  0x38   : > { %p851_p6 = pnand %p850_p3, %p844_p13 }
  0x3a   : > { %854 = shalt.err (!%p851_p6)
}
  0x3b   : > { %725 = dma.hbm_to_vmem [thread:$0]  (!%p1061_p7), %s1236_s2, 2048, %s1065_s29, [#allocation7], %s973_s12, %s973_s12, %s974_s13  }
  0x3c   : > { %s28_s11 = sadd.s32 1, %s965_s19  ;;  %s40_s14 = sadd.s32 1, %s957_s17 }
  0x3d   : > { %p29_p9 = scmp.ge.s32.totalorder %s28_s11, 8  ;;  %p47_p8 = scmp.ne.s32.totalorder %s957_s17, %s953_s16 }
  0x3e   : > { %p48_p1 = scmp.eq.s32.totalorder %s969_s20, 0  ;;  %p732_p4 = scmp.lt.s32.totalorder %s969_s20, 8 }
  0x3f   : > { %s1258_s11 = smov (%p29_p9, %s28_s11), 0  ;;  %s195_s27 = sand.u32 1, %s957_s17  }
  0x40   : > { %p49_p5 = por %p48_p1, %p47_p8  ;;  %s35_s15 = ssub.s32 %s965_s19, %s1258_s11 }
  0x41   : > { %p38_p10 = scmp.eq.s32.totalorder %s35_s15, 0  ;;  %s540_s25 = sshll.u32 %s195_s27, 3 }
  0x42   : > { %s541_s28 = sshll.u32 %s965_s19, 7  ;;  %s199_s13 = scalar_lea.vmem [#allocation3], %s540_s25 }
  0x43   : > { %s1127_s30 = scalar_select %p38_p10, %s957_s17, %s40_s14  }
  0x44   : > { %s1132_s12 = scalar_lea.hbm %s1234_s0, %s541_s28  ;;  %s207_s6 = sshll.u32 %s199_s13, 4  ;;  %s1134_s6 = int_to_ptr.vmem [resolvable:$true] %s207_s6 }
  0x45   : > { %p1138_p7 = pnand %p732_p4, %p49_p5  ;;  %s196_s8 = scalar_lea.sflag [#allocation4], %s195_s27 }
  0x46   : > { %s855_s26 = scalar_lea.hbm %s1132_s12, 128  ;;  %s860_s14 = scalar_lea.hbm %s1234_s0, 1024 }
  0x47   : > { %p856_p11 = scmp.ne.s32.totalorder %s1132_s12, %s855_s26  ;;  %p857_p12 = pneg %p1138_p7 }
  0x48   : > { %p861_p2 = scmp.lt.u32.totalorder %s1132_s12, %s1234_s0  ;;  %p862_p3 = scmp.lt.u32.totalorder %s860_s14, %s855_s26 }
  0x49   : > { %p858_p13 = pnand %p857_p12, %p856_p11  ;;  %p864_p9 = scmp.lt.u32.totalorder %s855_s26, %s1132_s12 }
  0x4a   : > { %p863_p6 = por %p862_p3, %p861_p2 }
  0x4b   : > { %p859_p0 = pneg %p858_p13 }
  0x4c   : > { %p865_p8 = por %p864_p9, %p863_p6 }
  0x4e   : > { %p866_p1 = pnand %p865_p8, %p859_p0 }
  0x50   : > { %869 = shalt.err (!%p866_p1)
}
  0x51   : > { %s870_s27 = scalar_lea.vmem %s1134_s6, 128  ;;  %s975_s28 = smov [#allocation3]  }
  0x52   : > { %p871_p4 = scmp.ne.s32.totalorder %s1134_s6, %s870_s27  ;;  %s875_s5 = sshll.u32 %s975_s28, 4  ;;  %s876_s5 = int_to_ptr.vmem [resolvable:$false] %s875_s5 }
  0x53   : > { %s877_s29 = scalar_lea.vmem %s876_s5, 256  ;;  %p878_p11 = scmp.lt.s32.totalorder %s1134_s6, %s876_s5 }
  0x54   : > { %p873_p5 = pnand %p871_p4, %p857_p12  ;;  %p879_p13 = scmp.lt.s32.totalorder %s877_s29, %s870_s27 }
  0x56   : > { %p874_p10 = pneg %p873_p5  ;;  %p880_p2 = por %p879_p13, %p878_p11 }
  0x58   : > { %p881_p3 = pnand %p880_p2, %p874_p10 }
  0x5a   : > { %884 = shalt.err (!%p881_p3)
}
  0x5b   : > { %729 = dma.hbm_to_vmem [thread:$0]  (!%p1138_p7), %s1132_s12, 128, %s1134_s6, %s196_s8  }
  0x5c   : > { %p1248_p0 = scmp.ne.s32.totalorder %s1245_s24, 0 }
  0x5d   : > { %s218_s13 = sand.u32 (!%p1248_p0), 1, %s953_s16   ;;  %p1249_p12 = scmp.ne.s32.totalorder (!%p1248_p0), %s1244_s23, 0 }
  0x5e   : > { %216 = sbr.rel (%p1248_p0) target bundleno = 621 (0x26d), region = 36  ;;  %s1170_s26 = sshll.u32 (!%p1248_p0), %s218_s13, 3 }
  0x5f   : > { %s219_s9 = scalar_lea.sflag (!%p1248_p0), [#allocation4], %s218_s13  ;;  %s222_s10 = scalar_lea.vmem (!%p1248_p0), [#allocation3], %s1170_s26 }
  0x65   : > { %936 = dma.done.wait (%p1249_p12), %s219_s9, 128  }
  0x66   : > { %938 = vsyncadd (%p1249_p12), %s219_s9, 4294967168  ;;  %p1250_p6 = scmp.ne.s32.totalorder %s1243_s22, 0 }
  0x68   : > { %940 = dma.done.wait (%p1250_p6), [#allocation7], 4096  }
  0x69   : > { %942 = vsyncadd (%p1250_p6), [#allocation7], 4294963200  ;;  %p546_p7 = scmp.ne.s32.totalorder %s961_s18, 0 }
  0x6a   : > { %v976_v0 = vmov (!%p546_p7), 0.0  }
  0x6b   : > { %253 = sbr.rel (%p546_p7) target bundleno = 114 (0x72), region = 52  ;;  %254 = vst [vmem:[#allocation2] sm:$0xff] (!%p546_p7), %v976_v0 }
  0x72 PF: > { %v257_v1 = vld [vmem:[#allocation6] sm:$0xff]  ;;  %v258_v2 = vld [vmem:[#allocation6 + $0x8] sm:$0xff]  ;;  %v259_v3 = vld [vmem:[#allocation6 + $0x10] sm:$0xff]  ;;  %v977_v4 = vmov 0.0|0.0   ;;  %vm978_vm0 = vmmov 0   ;;  %v979_v7 = vmov 0.0  }
  0x73   : > { %657 = vmatprep.subr.bf16.mxu0 %v977_v4  ;;  %v658_v5 = vpack.c.bf16 %v258_v2, %v257_v1  ;;  %v260_v6 = vld [vmem:[#allocation6 + $0x18] sm:$0xff]  ;;  %619 = vmatprep.mubr.msk.f32.mxu0 %vm978_vm0, %v979_v7  ;;  %v261_v9 = vld [vmem:[#allocation6 + $0x20] sm:$0xff]  ;;  %v262_v10 = vld [vmem:[#allocation6 + $0x28] sm:$0xff]  ;;  %p547_p9 = scmp.ne.s32.totalorder %s961_s18, 7 }
  0x74   : > { %v661_v8 = vpack.c.bf16 %v260_v6, %v259_v3  ;;  %v664_v11 = vpack.c.bf16 %v262_v10, %v261_v9  ;;  %v263_v12 = vld [vmem:[#allocation6 + $0x30] sm:$0xff]  ;;  %v264_v13 = vld [vmem:[#allocation6 + $0x38] sm:$0xff]  ;;  %v265_v15 = vld [vmem:[#allocation6 + $0x40] sm:$0xff]  ;;  %v980_v36 = vmov (!%p547_p9), 0.0|0.0   ;;  %vm981_vm1 = vmmov (!%p547_p9), 0  }
  0x75   : > { %659 = vmatpush3.bf16.msra.mxu0 %v658_v5  ;;  %v667_v14 = vpack.c.bf16 %v264_v13, %v263_v12  ;;  %v266_v16 = vld [vmem:[#allocation6 + $0x48] sm:$0xff]  ;;  %v267_v18 = vld [vmem:[#allocation6 + $0x50] sm:$0xff]  ;;  %v268_v19 = vld [vmem:[#allocation6 + $0x58] sm:$0xff]  ;;  %v982_v39 = vmov (!%p547_p9), 0.0  }
  0x76   : > { %660 = vmatprep.subr.bf16.mxu0 %v977_v4  ;;  %v670_v17 = vpack.c.bf16 %v266_v16, %v265_v15  ;;  %v673_v20 = vpack.c.bf16 %v268_v19, %v267_v18  ;;  %v269_v21 = vld [vmem:[#allocation6 + $0x60] sm:$0xff]  ;;  %v270_v22 = vld [vmem:[#allocation6 + $0x68] sm:$0xff]  ;;  %v271_v24 = vld [vmem:[#allocation6 + $0x70] sm:$0xff] }
  0x77   : > { %v676_v23 = vpack.c.bf16 %v270_v22, %v269_v21  ;;  %v272_v25 = vld [vmem:[#allocation6 + $0x78] sm:$0xff]  ;;  %v256_v27 = vld [vmem:[#allocation2] sm:$0xff]  ;;  %v351_v33 = vld [vmem:[#allocation8] sm:$0xff] (!%p547_p9) }
  0x78   : > { %v679_v26 = vpack.c.bf16 %v272_v25, %v271_v24  ;;  %v255_v28 = vld [vmem:[%s222_s10] sm:$0xff]  ;;  %v352_v34 = vld [vmem:[#allocation8 + $0x8] sm:$0xff] (!%p547_p9)  ;;  %v355_v41 = vld [vmem:[#allocation8 + $0x20] sm:$0xff] (!%p547_p9) }
  0x79   : > { %662 = vmatpush3.bf16.msra.mxu0 %v661_v8  ;;  %v353_v35 = vld [vmem:[#allocation8 + $0x10] sm:$0xff] (!%p547_p9)  ;;  %v682_v37 = vpack.c.bf16 (!%p547_p9), %v352_v34, %v351_v33  ;;  %v354_v38 = vld [vmem:[#allocation8 + $0x18] sm:$0xff] (!%p547_p9)  ;;  %v356_v42 = vld [vmem:[#allocation8 + $0x28] sm:$0xff] (!%p547_p9) }
  0x7a   : > { %663 = vmatprep.subr.bf16.mxu0 %v977_v4  ;;  %v685_v40 = vpack.c.bf16 (!%p547_p9), %v354_v38, %v353_v35  ;;  %v688_v43 = vpack.c.bf16 (!%p547_p9), %v356_v42, %v355_v41  ;;  %v357_v44 = vld [vmem:[#allocation8 + $0x30] sm:$0xff] (!%p547_p9)  ;;  %v358_v45 = vld [vmem:[#allocation8 + $0x38] sm:$0xff] (!%p547_p9)  ;;  %v359_v47 = vld [vmem:[#allocation8 + $0x40] sm:$0xff] (!%p547_p9) }
  0x7b   : > { %v691_v46 = vpack.c.bf16 (!%p547_p9), %v358_v45, %v357_v44  ;;  %v360_v48 = vld [vmem:[#allocation8 + $0x48] sm:$0xff] (!%p547_p9)  ;;  %v361_v50 = vld [vmem:[#allocation8 + $0x50] sm:$0xff] (!%p547_p9)  ;;  %v362_v51 = vld [vmem:[#allocation8 + $0x58] sm:$0xff] (!%p547_p9) }
  0x7c   : > { %v694_v49 = vpack.c.bf16 (!%p547_p9), %v360_v48, %v359_v47  ;;  %v697_v52 = vpack.c.bf16 (!%p547_p9), %v362_v51, %v361_v50  ;;  %v363_v53 = vld [vmem:[#allocation8 + $0x60] sm:$0xff] (!%p547_p9)  ;;  %v364_v54 = vld [vmem:[#allocation8 + $0x68] sm:$0xff] (!%p547_p9)  ;;  %v365_v56 = vld [vmem:[#allocation8 + $0x70] sm:$0xff] (!%p547_p9) }
  0x7d   : > { %665 = vmatpush3.bf16.msra.mxu0 %v664_v11  ;;  %v700_v55 = vpack.c.bf16 (!%p547_p9), %v364_v54, %v363_v53  ;;  %v366_v57 = vld [vmem:[#allocation8 + $0x78] sm:$0xff] (!%p547_p9)  ;;  %v548_v60 = vld [vmem:[%s1237_s3] ss:$0 sm:$0xff] (!%p547_p9) }
  0x7e   : > { %666 = vmatprep.subr.bf16.mxu0 %v977_v4  ;;  %v703_v58 = vpack.c.bf16 (!%p547_p9), %v366_v57, %v365_v56 }
  0x81   : > { %668 = vmatpush3.bf16.msra.mxu0 %v667_v14 }
  0x82   : > { %669 = vmatprep.subr.bf16.mxu0 %v977_v4 }
  0x85   : > { %671 = vmatpush3.bf16.msra.mxu0 %v670_v17 }
  0x86   : > { %672 = vmatprep.subr.bf16.mxu0 %v977_v4 }
  0x89   : > { %674 = vmatpush3.bf16.msra.mxu0 %v673_v20 }
  0x8a   : > { %675 = vmatprep.subr.bf16.mxu0 %v977_v4 }
  0x8d   : > { %677 = vmatpush3.bf16.msra.mxu0 %v676_v23 }
  0x8e   : > { %678 = vmatprep.subr.bf16.mxu0 %v977_v4 }
  0x91   : > { %680 = vmatpush3.bf16.msra.mxu0 %v679_v26 }
  0x92   : > { %681 = vmatprep.subr.bf16.mxu0 (!%p547_p9), %v980_v36 }
  0x94   : > { %620 = vmatmul.mubr.f32.vlgmr.msra.gmra.mrb[0].mxu0 %v256_v27 }
  0x95   : > { %654 = vmatprep.mubr.msk.f32.mxu0 (!%p547_p9), %vm981_vm1, %v982_v39  ;;  %683 = vmatpush3.bf16.msra.mxu0 (!%p547_p9), %v682_v37 }
  0x96   : > { %684 = vmatprep.subr.bf16.mxu0 (!%p547_p9), %v980_v36 }
  0x99   : > { %686 = vmatpush3.bf16.msra.mxu0 (!%p547_p9), %v685_v40 }
  0x9a   : > { %687 = vmatprep.subr.bf16.mxu0 (!%p547_p9), %v980_v36 }
  0x9d   : > { %689 = vmatpush3.bf16.msra.mxu0 (!%p547_p9), %v688_v43 }
  0x9e   : > { %690 = vmatprep.subr.bf16.mxu0 (!%p547_p9), %v980_v36 }
  0xa1   : > { %692 = vmatpush3.bf16.msra.mxu0 (!%p547_p9), %v691_v46 }
  0xa2   : > { %693 = vmatprep.subr.bf16.mxu0 (!%p547_p9), %v980_v36 }
  0xa5   : > { %695 = vmatpush3.bf16.msra.mxu0 (!%p547_p9), %v694_v49 }
  0xa6   : > { %696 = vmatprep.subr.bf16.mxu0 (!%p547_p9), %v980_v36 }
  0xa9   : > { %698 = vmatpush3.bf16.msra.mxu0 (!%p547_p9), %v697_v52 }
  0xaa   : > { %699 = vmatprep.subr.bf16.mxu0 (!%p547_p9), %v980_v36 }
  0xad   : > { %701 = vmatpush3.bf16.msra.mxu0 (!%p547_p9), %v700_v55 }
  0xae   : > { %702 = vmatprep.subr.bf16.mxu0 (!%p547_p9), %v980_v36 }
  0xb1   : > { %704 = vmatpush3.bf16.msra.mxu0 (!%p547_p9), %v703_v58 }
 0x167   : > { %v339_v29 = vpop.f32.mrb[0].mxu0 }
 0x168   : > { %v343_v30 = vadd.f32 %v339_v29, %v255_v28  ;;  %v621_v31 = vpop.f32.mrb[1].mxu0 }
 0x16a   : > { %797 = vtanh.f32 %v343_v30 }
 0x16f   : > { %349 = sbr.rel (%p547_p9) target bundleno = 596 (0x254), region = 56 }
 0x174   : > { %v798_v32 = vpop.eup %797 }
 0x175   : > { %345 = vst [vmem:[#allocation2] sm:$0xff] %v798_v32 }
 0x17c   : > { %v350_v59 = vld [vmem:[#allocation2] sm:$0xff] }
 0x17d   : > { %655 = vmatmul.mubr.f32.vlgmr.msra.gmra.mrb[0].mxu0 %v350_v59 }
 0x250   : > { %v440_v61 = vpop.f32.mrb[0].mxu0 }
 0x251   : > { %v441_v62 = vadd.f32 %v548_v60, %v440_v61  ;;  %v656_v63 = vpop.f32.mrb[1].mxu0 }
 0x253   : > { %444 = vst [vmem:[#allocation9] sm:$0xff] %v441_v62 }
 0x254 PF: > { %p1190_p8 = scmp.eq.s32.totalorder %s535_s21, 7  ;;  %s983_s24 = smov [#allocation9]  }
 0x255   : > { %s454_s12 = sshll.u32 %s983_s24, 4  ;;  %s455_s12 = int_to_ptr.vmem [resolvable:$true] %s454_s12 }
 0x256   : > { %s885_s6 = scalar_lea.vmem %s455_s12, 128  ;;  %p892_p10 = scmp.lt.s32.totalorder %s455_s12, %s455_s12 }
 0x257   : > { %p886_p1 = scmp.ne.s32.totalorder %s455_s12, %s885_s6  ;;  %p893_p11 = scmp.lt.s32.totalorder %s885_s6, %s885_s6 }
 0x259   : > { %p887_p4 = pnand %p886_p1, %p1190_p8  ;;  %p894_p13 = por %p893_p11, %p892_p10 }
 0x25b   : > { %p888_p5 = pneg %p887_p4 }
 0x25d   : > { %p895_p2 = pnand %p894_p13, %p888_p5 }
 0x25f   : > { %898 = shalt.err (!%p895_p2)
}
 0x260   : > { %s899_s21 = scalar_lea.hbm %s1238_s4, 128 }
 0x261   : > { %p900_p3 = scmp.ne.s32.totalorder %s1238_s4, %s899_s21  ;;  %p905_p6 = scmp.lt.u32.totalorder %s899_s21, %s1238_s4 }
 0x263   : > { %p901_p0 = pnand %p900_p3, %p1190_p8 }
 0x265   : > { %p902_p12 = pneg %p901_p0 }
 0x267   : > { %p907_p7 = pnand %p905_p6, %p902_p12 }
 0x269   : > { %910 = shalt.err (!%p907_p7)
}
 0x26a   : > { %716 = dma.vmem_to_hbm [thread:$0]  (%p1190_p8), %s455_s12, 128, %s1238_s4, [#allocation5]  }
 0x26b   : > { %944 = dma.done.wait (%p1190_p8), [#allocation5], 128  }
 0x26c   : > { %946 = vsyncadd (%p1190_p8), [#allocation5], 4294967168 }
 0x26d PF: > { %s19_s20 = sadd.s32 1, %s969_s20   ;;  %s1252_s15 = smov %s953_s16 }
 0x26e   : > { %p16_p9 = scmp.ge.s32.totalorder %s19_s20, 10   ;;  %s1253_s16 = smov %s957_s17 }
 0x26f   : > { %s1254_s17 = smov %s1127_s30  ;;  %s1255_s18 = smov %s965_s19 }
 0x270   : > { %s1256_s19 = smov %s1258_s11  ;;  %18 = sbr.rel (!%p16_p9) target bundleno = 6 (0x6), region = 90 }
 0x277   :  { %467 = vsyncpa [#allocation4], 1 }
 0x278   :  { %469 = vsyncpa [#allocation4 + $0x1], 1 }
 0x279   :  { %470 = vsyncpa [#allocation7], 1 }
 0x27a   :  { %471 = vsyncpa [#allocation5], 1 }
 0x27b   :  { %473 = vsyncpa [#allocation5 + $0x1], 1 }

</bundles_post_ra>
